<compile_context>
chip_gen: v5e
topology: v5e:2x2
jax: 0.10.0
libtpu: 0.0.40
codegen_flags: <defaults>
</compile_context>

<pallas_src>
import math
from functools import partial

import numpy as np
import jax
import jax.numpy as jnp
from jax.experimental import pallas as pl
from jax.experimental.pallas import tpu as pltpu

# ----------------------- config (stands in for `args`) -----------------------
N_LAYER = 2            # args.layer
DIM_ATOM = 32          # args.dim_atom
DIM_GRAPH = 32         # args.dim_graph
NUM_NEIGHBOR = 6       # args.num_neighbor
FEATURE_LEN = 16       # node-feature vocab
MFEA_DIM = 40          # molecule raw-feature width (fea_emb is (40, dim_graph))
NUM_MOL = 50           # number of entities in all_mfea / neighbor_matrix
OUT_PAD = 128          # lane-dense packed output width
# RG_agg = 'att', graph_agg = 'cat', gnn = 'gcn'


def _r8(x):
    return (x + 7) // 8 * 8


MOL_PAD = _r8(NUM_MOL)           # 56 (mfea rows padded with zeros)


def _param_layout():
    """Row offsets of every parameter chunk inside the single packed
    (rows, 128) f32 buffer.  Every chunk starts on an 8-row boundary so all
    in-kernel ref slices are sublane-tile aligned."""
    lay = {"gcn_w": [], "gcn_b": []}
    off = 0
    in_f = FEATURE_LEN
    for _ in range(N_LAYER):
        lay["gcn_w"].append((off, in_f)); off += _r8(in_f)
        lay["gcn_b"].append(off);         off += 8
        in_f = DIM_ATOM
    lay["mfea"] = off; off += MOL_PAD           # all_mfea, cols 0:MFEA_DIM
    lay["femb"] = off; off += _r8(MFEA_DIM)     # fea_emb,  cols 0:DIM_GRAPH
    lay["att"]  = off; off += 8                 # att_w,    cols 0:DIM_GRAPH
    lay["attb"] = off; off += 8                 # att_b replicated, cols 0:DIM_GRAPH
    lay["wpk"]  = off; off += _r8(DIM_GRAPH)    # [0 | I | crosscl_w | 0], 128 wide
    lay["bpk"]  = off; off += 8                 # [0 | 0 | crosscl_b | 0], 128 wide
    lay["p0"]   = off; off += _r8(DIM_ATOM)     # [I | 0 | 0 | 0],        128 wide
    lay["rows"] = off
    return lay


# ------------------------------- fused kernel --------------------------------
def _gnn_fused_kernel(lay, n_layer, n_rg, num_neighbor, dim_atom, dim_graph,
                      bp, a_ref, pool_ref, h0_ref, ids_ref, prm_ref, o_ref):
    f32 = jnp.float32
    P = prm_ref

    # ---- GCN stack: h carried in registers across layers (no HBM bounce) ----
    a = a_ref[...]                                                # (N, N)
    h = h0_ref[...]                                               # (N, F)
    for li in range(n_layer):
        rw, in_f = lay["gcn_w"][li]
        rb = lay["gcn_b"][li]
        w = P[rw:rw + in_f, 0:dim_atom]
        b = P[rb:rb + 1, 0:dim_atom]
        h = jnp.dot(a, h, preferred_element_type=f32)             # A_norm @ h
        h = jnp.dot(h, w, preferred_element_type=f32) + b
        if li != n_layer - 1:
            h = jnp.maximum(h, 0.0)

    # ---- factor normalisation + SumPooling (scale AFTER the pool matmul) ----
    norms = jnp.sqrt(jnp.sum(h * h, axis=-1, keepdims=True))      # (N, 1)
    factor = math.sqrt(dim_atom) / jnp.mean(norms)
    mol_atom = jnp.dot(pool_ref[...], h,
                       preferred_element_type=f32) * factor       # (bp, Da)

    # ---- molecule embedding table, computed ONCE: (MOL_PAD, Dg) ----
    mfea = P[lay["mfea"]:lay["mfea"] + MOL_PAD, 0:MFEA_DIM]
    femb = P[lay["femb"]:lay["femb"] + MFEA_DIM, 0:dim_graph]
    table = jnp.dot(mfea, femb, preferred_element_type=f32)

    # ---- ONE gather matmul for every item / target / neighbor embedding ----
    rows = ids_ref.shape[0]
    iota = jax.lax.broadcasted_iota(jnp.int32, (rows, MOL_PAD), 1)
    sel = (ids_ref[...] == iota).astype(f32)                      # (rows, 56)
    emb = jnp.dot(sel, table, preferred_element_type=f32)         # (rows, Dg)

    blk = (2 + num_neighbor) * bp                                 # rows per hop
    item_of = lambda i: emb[i * blk: i * blk + bp]
    tgt_of = lambda i: emb[i * blk + bp: i * blk + 2 * bp]
    nei_of = lambda i, k: emb[i * blk + (2 + k) * bp: i * blk + (3 + k) * bp]

    inv_l = 1.0 / n_rg
    items = [item_of(i) for i in range(n_rg)]                     # reused below
    src_re = sum(items) * inv_l                                   # source_reaction
    tgt_re = sum(tgt_of(i) for i in range(n_rg)) * inv_l          # target_reaction
    target_emb = src_re + tgt_re                                  # (bp, Dg)

    attw = P[lay["att"]:lay["att"] + 1, 0:dim_graph]              # (1, Dg)
    attb = P[lay["attb"]:lay["attb"] + 1, 0:dim_graph][:, 0:1]    # (1, 1)

    agg = jnp.zeros((bp, dim_graph), f32)
    for i in range(n_rg):
        it_emb = items[i]
        q = it_emb * target_emb * attw                            # att_w folded in
        neis = [nei_of(i, k) for k in range(num_neighbor)]
        sc = [jnp.sum(neis[k] * q, axis=-1, keepdims=True) + attb
              for k in range(num_neighbor)]                       # each (bp, 1)
        m = sc[0]
        for k in range(1, num_neighbor):
            m = jnp.maximum(m, sc[k])
        es = [jnp.exp(sc[k] - m) for k in range(num_neighbor)]
        denom = es[0]
        for k in range(1, num_neighbor):
            denom = denom + es[k]
        inv_d = 1.0 / denom                                       # exact divide
        wsum = (es[0] * inv_d) * neis[0]
        for k in range(1, num_neighbor):
            wsum = wsum + (es[k] * inv_d) * neis[k]
        agg = agg + it_emb + wsum
    mol_reaction = agg * inv_l                                    # (bp, Dg)

    # ---- epilogue: 2 placement matmuls -> lane-dense unmasked (bp,128) store
    #      [mol_atom | mol_reaction | mol_reaction @ crosscl_w + b | 0-pad]
    p0 = P[lay["p0"]:lay["p0"] + dim_atom, :]                     # (Da, 128)
    wpk = P[lay["wpk"]:lay["wpk"] + dim_graph, :]                 # (Dg, 128)
    bpk = P[lay["bpk"]:lay["bpk"] + 1, :]                         # (1, 128)
    o_ref[...] = (jnp.dot(mol_atom, p0, preferred_element_type=f32)
                  + jnp.dot(mol_reaction, wpk, preferred_element_type=f32)
                  + bpk)


# ------------------------------ parameter setup -------------------------------
def _xavier_uniform(key, shape):
    bound = math.sqrt(6.0 / (shape[0] + shape[1]))
    return jax.random.uniform(key, shape, jnp.float32, -bound, bound)


def init_params(key):
    keys = jax.random.split(key, 8)
    gcn = []
    in_f = FEATURE_LEN
    for i in range(N_LAYER):
        gcn.append((_xavier_uniform(keys[i], (in_f, DIM_ATOM)),
                    jnp.zeros((1, DIM_ATOM), jnp.float32)))
        in_f = DIM_ATOM
    # TODO(synk): rel_emb / all_rfea relation embedding is computed but never
    # used in the reference 'att' branch, so it is skipped here (dead compute).
    return {
        "gcn": gcn,
        "fea_emb": _xavier_uniform(keys[2], (MFEA_DIM, DIM_GRAPH)),
        "att_w": _xavier_uniform(keys[4], (1, DIM_GRAPH)),
        "att_b": jax.random.uniform(keys[5], (1, 1), jnp.float32,
                                    -1.0 / math.sqrt(DIM_GRAPH),
                                    1.0 / math.sqrt(DIM_GRAPH)),
        "crosscl_w": _xavier_uniform(keys[6], (DIM_GRAPH, DIM_ATOM)),
        "crosscl_b": jax.random.uniform(keys[7], (1, DIM_ATOM), jnp.float32,
                                        -1.0 / math.sqrt(DIM_GRAPH),
                                        1.0 / math.sqrt(DIM_GRAPH)),
    }


def _pack_params(params, all_mfea, lay):
    """All small parameter arrays packed into ONE (rows, 128) f32 buffer."""
    buf = jnp.zeros((lay["rows"], OUT_PAD), jnp.float32)
    for i, (w, b) in enumerate(params["gcn"]):
        r, in_f = lay["gcn_w"][i]
        buf = buf.at[r:r + in_f, 0:DIM_ATOM].set(w)
        rb = lay["gcn_b"][i]
        buf = buf.at[rb:rb + 1, 0:DIM_ATOM].set(b)
    buf = buf.at[lay["mfea"]:lay["mfea"] + NUM_MOL, 0:MFEA_DIM].set(all_mfea)
    buf = buf.at[lay["femb"]:lay["femb"] + MFEA_DIM, 0:DIM_GRAPH].set(params["fea_emb"])
    buf = buf.at[lay["att"]:lay["att"] + 1, 0:DIM_GRAPH].set(params["att_w"])
    buf = buf.at[lay["attb"]:lay["attb"] + 1, 0:DIM_GRAPH].set(
        jnp.broadcast_to(params["att_b"], (1, DIM_GRAPH)))
    # W_pack: identity (mol_reaction placement) in cols 32:64, crosscl_w in 64:96
    r = lay["wpk"]
    buf = buf.at[r:r + DIM_GRAPH, DIM_ATOM:DIM_ATOM + DIM_GRAPH].set(
        jnp.eye(DIM_GRAPH, dtype=jnp.float32))
    buf = buf.at[r:r + DIM_GRAPH,
                 DIM_ATOM + DIM_GRAPH:DIM_ATOM + DIM_GRAPH + DIM_ATOM].set(params["crosscl_w"])
    r = lay["bpk"]
    buf = buf.at[r:r + 1,
                 DIM_ATOM + DIM_GRAPH:DIM_ATOM + DIM_GRAPH + DIM_ATOM].set(params["crosscl_b"])
    r = lay["p0"]
    buf = buf.at[r:r + DIM_ATOM, 0:DIM_ATOM].set(jnp.eye(DIM_ATOM, dtype=jnp.float32))
    return buf


def _build_sel_ids(id_list, id_list_target, neighbor_matrix, bp):
    """One int32 id column; per hop: [item(bp) | target(bp) | nei_0..nei_{K-1}(bp)],
    each chunk padded to bp (>=8) rows so every in-kernel slice is tile aligned."""
    B = id_list[0].shape[0]
    pad_n = bp - B

    def pad(v):
        v = v.astype(jnp.int32)
        if pad_n:
            v = jnp.concatenate([v, jnp.zeros((pad_n,), jnp.int32)])
        return v

    chunks = []
    for i in range(len(id_list)):
        chunks.append(pad(id_list[i]))
        chunks.append(pad(id_list_target[i]))
        nei = neighbor_matrix[id_list[i]]            # (B, K) gather (XLA glue)
        for k in range(NUM_NEIGHBOR):
            chunks.append(pad(nei[:, k]))
    return jnp.concatenate(chunks).reshape(-1, 1)


# --------------------------------- forward ------------------------------------
@jax.jit
def gnn_forward(params, a_norm, pool_mat, feature, all_mfea,
                neighbor_matrix, id_list, id_list_target):
    f32 = jnp.float32
    L = len(id_list)
    B = id_list[0].shape[0]
    assert pool_mat.shape[0] == B, "graph_agg='cat' requires #graphs == batch"
    bp = max(8, _r8(B))                      # padded batch (sublane aligned)
    lay = _param_layout()

    # multi-hot node features (cheap XLA glue fused into the same program)
    h0 = jnp.sum(jax.nn.one_hot(feature, FEATURE_LEN, dtype=f32), axis=1)
    pool_pad = jnp.zeros((bp, pool_mat.shape[1]), f32).at[:B].set(pool_mat)
    ids = _build_sel_ids(id_list, id_list_target, neighbor_matrix, bp)
    prm = _pack_params(params, all_mfea, lay)

    packed = pl.pallas_call(
        partial(_gnn_fused_kernel, lay, N_LAYER, L, NUM_NEIGHBOR,
                DIM_ATOM, DIM_GRAPH, bp),
        out_shape=jax.ShapeDtypeStruct((bp, OUT_PAD), f32),
        in_specs=[pl.BlockSpec(memory_space=pltpu.MemorySpace.VMEM)] * 5,
        out_specs=pl.BlockSpec(memory_space=pltpu.MemorySpace.VMEM),
    )(a_norm, pool_pad, h0, ids, prm)

    packed = packed[:B]
    # graph_agg == 'cat' -> already contiguous in the packed lane-dense output
    mol_embedding = packed[:, :DIM_ATOM + DIM_GRAPH]
    mol_a_embedding = packed[:, :DIM_ATOM]
    mol_x_embedding = packed[:, DIM_ATOM + DIM_GRAPH:DIM_ATOM + DIM_GRAPH + DIM_ATOM]
    return mol_embedding, mol_a_embedding, mol_x_embedding


# ----------------------------------- main --------------------------------------
if __name__ == "__main__":
    key = jax.random.PRNGKey(0)
    k_param, k_feat, k_mfea, k_nei, k_id0, k_id1, k_it0, k_it1 = jax.random.split(key, 8)

    params = init_params(k_param)

    # batched graph: G=4 ring graphs of 5 nodes each (N=20), degree 2 everywhere
    G, npg = 4, 5
    N = G * npg
    A = np.zeros((N, N), np.float32)
    for g in range(G):
        off = g * npg
        for j in range(npg):
            u, v = off + j, off + (j + 1) % npg
            A[u, v] = 1.0
            A[v, u] = 1.0
    dis = 1.0 / np.sqrt(A.sum(axis=1))
    a_norm = jnp.asarray(A * dis[None, :] * dis[:, None])                  # (N, N)
    pool = np.zeros((G, N), np.float32)
    for g in range(G):
        pool[g, g * npg:(g + 1) * npg] = 1.0
    pool_mat = jnp.asarray(pool)                                            # (G, N)

    # node features: 3 categorical fields per node
    feature = jax.random.randint(k_feat, (N, 3), 0, FEATURE_LEN)

    # knowledge-graph side inputs
    all_mfea = (jax.random.uniform(k_mfea, (NUM_MOL, MFEA_DIM)) < 0.3).astype(jnp.float32)
    neighbor_matrix = jax.random.randint(k_nei, (NUM_MOL, NUM_NEIGHBOR), 0, NUM_MOL)

    B = G  # batch of molecules equals number of graphs (required by 'cat')
    id_list = [jax.random.randint(k_id0, (B,), 0, NUM_MOL),
               jax.random.randint(k_id1, (B,), 0, NUM_MOL)]
    id_list_target = [jax.random.randint(k_it0, (B,), 0, NUM_MOL),
                      jax.random.randint(k_it1, (B,), 0, NUM_MOL)]

    mol_emb, mol_a_emb, mol_x_emb = gnn_forward(
        params, a_norm, pool_mat, feature, all_mfea,
        neighbor_matrix, id_list, id_list_target)

    jax.block_until_ready((mol_emb, mol_a_emb, mol_x_emb))
    assert mol_emb.shape == (B, DIM_ATOM + DIM_GRAPH)
    assert mol_a_emb.shape == (B, DIM_ATOM)
    assert mol_x_emb.shape == (B, DIM_ATOM)
    assert bool(jnp.all(jnp.isfinite(mol_emb)))
    assert bool(jnp.all(jnp.isfinite(mol_x_emb)))
    print("KERNEL_OK")
</pallas_src>

<mosaic_0001>
module attributes {stable_mosaic.version = 11 : i64} {
  func.func @_gnn_fused_kernel(%arg0: memref<20x20xf32, #tpu.memory_space<vmem>>, %arg1: memref<8x20xf32, #tpu.memory_space<vmem>>, %arg2: memref<20x16xf32, #tpu.memory_space<vmem>>, %arg3: memref<128x1xi32, #tpu.memory_space<vmem>>, %arg4: memref<248x128xf32, #tpu.memory_space<vmem>>, %arg5: memref<8x128xf32, #tpu.memory_space<vmem>>) attributes {dimension_semantics = [], scalar_prefetch = 0 : i64, scratch_operands = 0 : i64, tpu.core_type = #tpu.core_type<tc>} {
    %c0 = arith.constant 0 : index
    %c0_0 = arith.constant 0 : index
    %0 = vector.load %arg0[%c0, %c0_0] : memref<20x20xf32, #tpu.memory_space<vmem>>, vector<20x20xf32>
    %c0_1 = arith.constant 0 : index
    %c0_2 = arith.constant 0 : index
    %1 = vector.load %arg2[%c0_1, %c0_2] : memref<20x16xf32, #tpu.memory_space<vmem>>, vector<20x16xf32>
    %c0_3 = arith.constant 0 : index
    %c0_4 = arith.constant 0 : index
    %2 = vector.load %arg4[%c0_3, %c0_4] : memref<248x128xf32, #tpu.memory_space<vmem>>, vector<16x32xf32>
    %c16 = arith.constant 16 : index
    %c0_5 = arith.constant 0 : index
    %3 = vector.load %arg4[%c16, %c0_5] : memref<248x128xf32, #tpu.memory_space<vmem>>, vector<1x32xf32>
    %cst = arith.constant dense<0.000000e+00> : vector<20x16xf32>
    %4 = tpu.matmul %0, %1, %cst {dimension_numbers = #tpu.dot_dimension_numbers<[1], [0], [0], [1], [0, 0, 1, 1], [], []>} : vector<20x20xf32>, vector<20x16xf32>, vector<20x16xf32> -> vector<20x16xf32>
    %cst_6 = arith.constant dense<0.000000e+00> : vector<20x32xf32>
    %5 = tpu.matmul %4, %2, %cst_6 {dimension_numbers = #tpu.dot_dimension_numbers<[1], [0], [0], [1], [0, 0, 1, 1], [], []>} : vector<20x16xf32>, vector<16x32xf32>, vector<20x32xf32> -> vector<20x32xf32>
    %6 = vector.broadcast %3 : vector<1x32xf32> to vector<20x32xf32>
    %7 = arith.addf %5, %6 : vector<20x32xf32>
    %cst_7 = arith.constant 0.000000e+00 : f32
    %8 = vector.broadcast %cst_7 : f32 to vector<20x32xf32>
    %9 = arith.maximumf %7, %8 : vector<20x32xf32>
    %c24 = arith.constant 24 : index
    %c0_8 = arith.constant 0 : index
    %10 = vector.load %arg4[%c24, %c0_8] : memref<248x128xf32, #tpu.memory_space<vmem>>, vector<32x32xf32>
    %c56 = arith.constant 56 : index
    %c0_9 = arith.constant 0 : index
    %11 = vector.load %arg4[%c56, %c0_9] : memref<248x128xf32, #tpu.memory_space<vmem>>, vector<1x32xf32>
    %cst_10 = arith.constant dense<0.000000e+00> : vector<20x32xf32>
    %12 = tpu.matmul %0, %9, %cst_10 {dimension_numbers = #tpu.dot_dimension_numbers<[1], [0], [0], [1], [0, 0, 1, 1], [], []>} : vector<20x20xf32>, vector<20x32xf32>, vector<20x32xf32> -> vector<20x32xf32>
    %cst_11 = arith.constant dense<0.000000e+00> : vector<20x32xf32>
    %13 = tpu.matmul %12, %10, %cst_11 {dimension_numbers = #tpu.dot_dimension_numbers<[1], [0], [0], [1], [0, 0, 1, 1], [], []>} : vector<20x32xf32>, vector<32x32xf32>, vector<20x32xf32> -> vector<20x32xf32>
    %14 = vector.broadcast %11 : vector<1x32xf32> to vector<20x32xf32>
    %15 = arith.addf %13, %14 : vector<20x32xf32>
    %16 = arith.mulf %15, %15 : vector<20x32xf32>
    %cst_12 = arith.constant dense<0.000000e+00> : vector<20xf32>
    %17 = vector.multi_reduction <add>, %16, %cst_12 [1] : vector<20x32xf32> to vector<20xf32>
    %18 = vector.shape_cast %17 : vector<20xf32> to vector<20x1xf32>
    %19 = math.sqrt %18 : vector<20x1xf32>
    %20 = vector.shape_cast %19 : vector<20x1xf32> to vector<1x20x1xf32>
    %cst_13 = arith.constant dense<0.000000e+00> : vector<1xf32>
    %21 = vector.multi_reduction <add>, %20, %cst_13 [1, 2] : vector<1x20x1xf32> to vector<1xf32>
    %22 = vector.shape_cast %21 : vector<1xf32> to vector<1x1x1xf32>
    %23 = vector.extract %22[0, 0, 0] : f32 from vector<1x1x1xf32>
    %cst_14 = arith.constant 2.000000e+01 : f32
    %24 = arith.divf %23, %cst_14 : f32
    %cst_15 = arith.constant 5.65685415 : f32
    %25 = arith.divf %cst_15, %24 : f32
    %c0_16 = arith.constant 0 : index
    %c0_17 = arith.constant 0 : index
    %26 = vector.load %arg1[%c0_16, %c0_17] : memref<8x20xf32, #tpu.memory_space<vmem>>, vector<8x20xf32>
    %cst_18 = arith.constant dense<0.000000e+00> : vector<8x32xf32>
    %27 = tpu.matmul %26, %15, %cst_18 {dimension_numbers = #tpu.dot_dimension_numbers<[1], [0], [0], [1], [0, 0, 1, 1], [], []>} : vector<8x20xf32>, vector<20x32xf32>, vector<8x32xf32> -> vector<8x32xf32>
    %28 = vector.broadcast %25 : f32 to vector<8x32xf32>
    %29 = arith.mulf %27, %28 : vector<8x32xf32>
    %c64 = arith.constant 64 : index
    %c0_19 = arith.constant 0 : index
    %30 = vector.load %arg4[%c64, %c0_19] : memref<248x128xf32, #tpu.memory_space<vmem>>, vector<56x40xf32>
    %c120 = arith.constant 120 : index
    %c0_20 = arith.constant 0 : index
    %31 = vector.load %arg4[%c120, %c0_20] : memref<248x128xf32, #tpu.memory_space<vmem>>, vector<40x32xf32>
    %cst_21 = arith.constant dense<0.000000e+00> : vector<56x32xf32>
    %32 = tpu.matmul %30, %31, %cst_21 {dimension_numbers = #tpu.dot_dimension_numbers<[1], [0], [0], [1], [0, 0, 1, 1], [], []>} : vector<56x40xf32>, vector<40x32xf32>, vector<56x32xf32> -> vector<56x32xf32>
    %33 = tpu.iota {dimensions = array<i32: 1>} : vector<128x56xi32>
    %c0_22 = arith.constant 0 : index
    %c0_23 = arith.constant 0 : index
    %34 = vector.load %arg3[%c0_22, %c0_23] : memref<128x1xi32, #tpu.memory_space<vmem>>, vector<128x1xi32>
    %35 = vector.broadcast %34 : vector<128x1xi32> to vector<128x56xi32>
    %36 = arith.cmpi eq, %35, %33 : vector<128x56xi32>
    %37 = arith.extui %36 : vector<128x56xi1> to vector<128x56xi32>
    %38 = arith.sitofp %37 : vector<128x56xi32> to vector<128x56xf32>
    %cst_24 = arith.constant dense<0.000000e+00> : vector<128x32xf32>
    %39 = tpu.matmul %38, %32, %cst_24 {dimension_numbers = #tpu.dot_dimension_numbers<[1], [0], [0], [1], [0, 0, 1, 1], [], []>} : vector<128x56xf32>, vector<56x32xf32>, vector<128x32xf32> -> vector<128x32xf32>
    %40 = vector.extract_strided_slice %39 {offsets = [0, 0], sizes = [8, 32], strides = [1, 1]} : vector<128x32xf32> to vector<8x32xf32>
    %41 = vector.extract_strided_slice %39 {offsets = [64, 0], sizes = [8, 32], strides = [1, 1]} : vector<128x32xf32> to vector<8x32xf32>
    %cst_25 = arith.constant 0.000000e+00 : f32
    %42 = vector.broadcast %cst_25 : f32 to vector<8x32xf32>
    %43 = arith.addf %42, %40 : vector<8x32xf32>
    %44 = arith.addf %43, %41 : vector<8x32xf32>
    %cst_26 = arith.constant 5.000000e-01 : f32
    %45 = vector.broadcast %cst_26 : f32 to vector<8x32xf32>
    %46 = arith.mulf %44, %45 : vector<8x32xf32>
    %47 = vector.extract_strided_slice %39 {offsets = [8, 0], sizes = [8, 32], strides = [1, 1]} : vector<128x32xf32> to vector<8x32xf32>
    %cst_27 = arith.constant 0.000000e+00 : f32
    %48 = vector.broadcast %cst_27 : f32 to vector<8x32xf32>
    %49 = arith.addf %48, %47 : vector<8x32xf32>
    %50 = vector.extract_strided_slice %39 {offsets = [72, 0], sizes = [8, 32], strides = [1, 1]} : vector<128x32xf32> to vector<8x32xf32>
    %51 = arith.addf %49, %50 : vector<8x32xf32>
    %cst_28 = arith.constant 5.000000e-01 : f32
    %52 = vector.broadcast %cst_28 : f32 to vector<8x32xf32>
    %53 = arith.mulf %51, %52 : vector<8x32xf32>
    %54 = arith.addf %46, %53 : vector<8x32xf32>
    %c160 = arith.constant 160 : index
    %c0_29 = arith.constant 0 : index
    %55 = vector.load %arg4[%c160, %c0_29] : memref<248x128xf32, #tpu.memory_space<vmem>>, vector<1x32xf32>
    %c168 = arith.constant 168 : index
    %c0_30 = arith.constant 0 : index
    %56 = vector.load %arg4[%c168, %c0_30] : memref<248x128xf32, #tpu.memory_space<vmem>>, vector<1x32xf32>
    %57 = vector.extract_strided_slice %56 {offsets = [0, 0], sizes = [1, 1], strides = [1, 1]} : vector<1x32xf32> to vector<1x1xf32>
    %cst_31 = arith.constant 0.000000e+00 : f32
    %58 = vector.broadcast %cst_31 : f32 to vector<8x32xf32>
    %59 = arith.mulf %40, %54 : vector<8x32xf32>
    %60 = vector.broadcast %55 : vector<1x32xf32> to vector<8x32xf32>
    %61 = arith.mulf %59, %60 : vector<8x32xf32>
    %62 = vector.extract_strided_slice %39 {offsets = [16, 0], sizes = [8, 32], strides = [1, 1]} : vector<128x32xf32> to vector<8x32xf32>
    %63 = vector.extract_strided_slice %39 {offsets = [24, 0], sizes = [8, 32], strides = [1, 1]} : vector<128x32xf32> to vector<8x32xf32>
    %64 = vector.extract_strided_slice %39 {offsets = [32, 0], sizes = [8, 32], strides = [1, 1]} : vector<128x32xf32> to vector<8x32xf32>
    %65 = vector.extract_strided_slice %39 {offsets = [40, 0], sizes = [8, 32], strides = [1, 1]} : vector<128x32xf32> to vector<8x32xf32>
    %66 = vector.extract_strided_slice %39 {offsets = [48, 0], sizes = [8, 32], strides = [1, 1]} : vector<128x32xf32> to vector<8x32xf32>
    %67 = vector.extract_strided_slice %39 {offsets = [56, 0], sizes = [8, 32], strides = [1, 1]} : vector<128x32xf32> to vector<8x32xf32>
    %68 = arith.mulf %62, %61 : vector<8x32xf32>
    %cst_32 = arith.constant dense<0.000000e+00> : vector<8xf32>
    %69 = vector.multi_reduction <add>, %68, %cst_32 [1] : vector<8x32xf32> to vector<8xf32>
    %70 = vector.shape_cast %69 : vector<8xf32> to vector<8x1xf32>
    %71 = vector.broadcast %57 : vector<1x1xf32> to vector<8x1xf32>
    %72 = arith.addf %70, %71 : vector<8x1xf32>
    %73 = arith.mulf %63, %61 : vector<8x32xf32>
    %cst_33 = arith.constant dense<0.000000e+00> : vector<8xf32>
    %74 = vector.multi_reduction <add>, %73, %cst_33 [1] : vector<8x32xf32> to vector<8xf32>
    %75 = vector.shape_cast %74 : vector<8xf32> to vector<8x1xf32>
    %76 = vector.broadcast %57 : vector<1x1xf32> to vector<8x1xf32>
    %77 = arith.addf %75, %76 : vector<8x1xf32>
    %78 = arith.mulf %64, %61 : vector<8x32xf32>
    %cst_34 = arith.constant dense<0.000000e+00> : vector<8xf32>
    %79 = vector.multi_reduction <add>, %78, %cst_34 [1] : vector<8x32xf32> to vector<8xf32>
    %80 = vector.shape_cast %79 : vector<8xf32> to vector<8x1xf32>
    %81 = vector.broadcast %57 : vector<1x1xf32> to vector<8x1xf32>
    %82 = arith.addf %80, %81 : vector<8x1xf32>
    %83 = arith.mulf %65, %61 : vector<8x32xf32>
    %cst_35 = arith.constant dense<0.000000e+00> : vector<8xf32>
    %84 = vector.multi_reduction <add>, %83, %cst_35 [1] : vector<8x32xf32> to vector<8xf32>
    %85 = vector.shape_cast %84 : vector<8xf32> to vector<8x1xf32>
    %86 = vector.broadcast %57 : vector<1x1xf32> to vector<8x1xf32>
    %87 = arith.addf %85, %86 : vector<8x1xf32>
    %88 = arith.mulf %66, %61 : vector<8x32xf32>
    %cst_36 = arith.constant dense<0.000000e+00> : vector<8xf32>
    %89 = vector.multi_reduction <add>, %88, %cst_36 [1] : vector<8x32xf32> to vector<8xf32>
    %90 = vector.shape_cast %89 : vector<8xf32> to vector<8x1xf32>
    %91 = vector.broadcast %57 : vector<1x1xf32> to vector<8x1xf32>
    %92 = arith.addf %90, %91 : vector<8x1xf32>
    %93 = arith.mulf %67, %61 : vector<8x32xf32>
    %cst_37 = arith.constant dense<0.000000e+00> : vector<8xf32>
    %94 = vector.multi_reduction <add>, %93, %cst_37 [1] : vector<8x32xf32> to vector<8xf32>
    %95 = vector.shape_cast %94 : vector<8xf32> to vector<8x1xf32>
    %96 = vector.broadcast %57 : vector<1x1xf32> to vector<8x1xf32>
    %97 = arith.addf %95, %96 : vector<8x1xf32>
    %98 = arith.maximumf %72, %77 : vector<8x1xf32>
    %99 = arith.maximumf %98, %82 : vector<8x1xf32>
    %100 = arith.maximumf %99, %87 : vector<8x1xf32>
    %101 = arith.maximumf %100, %92 : vector<8x1xf32>
    %102 = arith.maximumf %101, %97 : vector<8x1xf32>
    %103 = arith.subf %72, %102 : vector<8x1xf32>
    %104 = math.exp %103 : vector<8x1xf32>
    %105 = arith.subf %77, %102 : vector<8x1xf32>
    %106 = math.exp %105 : vector<8x1xf32>
    %107 = arith.subf %82, %102 : vector<8x1xf32>
    %108 = math.exp %107 : vector<8x1xf32>
    %109 = arith.subf %87, %102 : vector<8x1xf32>
    %110 = math.exp %109 : vector<8x1xf32>
    %111 = arith.subf %92, %102 : vector<8x1xf32>
    %112 = math.exp %111 : vector<8x1xf32>
    %113 = arith.subf %97, %102 : vector<8x1xf32>
    %114 = math.exp %113 : vector<8x1xf32>
    %115 = arith.addf %104, %106 : vector<8x1xf32>
    %116 = arith.addf %115, %108 : vector<8x1xf32>
    %117 = arith.addf %116, %110 : vector<8x1xf32>
    %118 = arith.addf %117, %112 : vector<8x1xf32>
    %119 = arith.addf %118, %114 : vector<8x1xf32>
    %cst_38 = arith.constant 1.000000e+00 : f32
    %120 = vector.broadcast %cst_38 : f32 to vector<8x1xf32>
    %121 = arith.divf %120, %119 : vector<8x1xf32>
    %122 = arith.mulf %104, %121 : vector<8x1xf32>
    %123 = vector.broadcast %122 : vector<8x1xf32> to vector<8x32xf32>
    %124 = arith.mulf %123, %62 : vector<8x32xf32>
    %125 = arith.mulf %106, %121 : vector<8x1xf32>
    %126 = vector.broadcast %125 : vector<8x1xf32> to vector<8x32xf32>
    %127 = arith.mulf %126, %63 : vector<8x32xf32>
    %128 = arith.addf %124, %127 : vector<8x32xf32>
    %129 = arith.mulf %108, %121 : vector<8x1xf32>
    %130 = vector.broadcast %129 : vector<8x1xf32> to vector<8x32xf32>
    %131 = arith.mulf %130, %64 : vector<8x32xf32>
    %132 = arith.addf %128, %131 : vector<8x32xf32>
    %133 = arith.mulf %110, %121 : vector<8x1xf32>
    %134 = vector.broadcast %133 : vector<8x1xf32> to vector<8x32xf32>
    %135 = arith.mulf %134, %65 : vector<8x32xf32>
    %136 = arith.addf %132, %135 : vector<8x32xf32>
    %137 = arith.mulf %112, %121 : vector<8x1xf32>
    %138 = vector.broadcast %137 : vector<8x1xf32> to vector<8x32xf32>
    %139 = arith.mulf %138, %66 : vector<8x32xf32>
    %140 = arith.addf %136, %139 : vector<8x32xf32>
    %141 = arith.mulf %114, %121 : vector<8x1xf32>
    %142 = vector.broadcast %141 : vector<8x1xf32> to vector<8x32xf32>
    %143 = arith.mulf %142, %67 : vector<8x32xf32>
    %144 = arith.addf %140, %143 : vector<8x32xf32>
    %145 = arith.addf %58, %40 : vector<8x32xf32>
    %146 = arith.addf %145, %144 : vector<8x32xf32>
    %147 = arith.mulf %41, %54 : vector<8x32xf32>
    %148 = vector.broadcast %55 : vector<1x32xf32> to vector<8x32xf32>
    %149 = arith.mulf %147, %148 : vector<8x32xf32>
    %150 = vector.extract_strided_slice %39 {offsets = [80, 0], sizes = [8, 32], strides = [1, 1]} : vector<128x32xf32> to vector<8x32xf32>
    %151 = vector.extract_strided_slice %39 {offsets = [88, 0], sizes = [8, 32], strides = [1, 1]} : vector<128x32xf32> to vector<8x32xf32>
    %152 = vector.extract_strided_slice %39 {offsets = [96, 0], sizes = [8, 32], strides = [1, 1]} : vector<128x32xf32> to vector<8x32xf32>
    %153 = vector.extract_strided_slice %39 {offsets = [104, 0], sizes = [8, 32], strides = [1, 1]} : vector<128x32xf32> to vector<8x32xf32>
    %154 = vector.extract_strided_slice %39 {offsets = [112, 0], sizes = [8, 32], strides = [1, 1]} : vector<128x32xf32> to vector<8x32xf32>
    %155 = vector.extract_strided_slice %39 {offsets = [120, 0], sizes = [8, 32], strides = [1, 1]} : vector<128x32xf32> to vector<8x32xf32>
    %156 = arith.mulf %150, %149 : vector<8x32xf32>
    %cst_39 = arith.constant dense<0.000000e+00> : vector<8xf32>
    %157 = vector.multi_reduction <add>, %156, %cst_39 [1] : vector<8x32xf32> to vector<8xf32>
    %158 = vector.shape_cast %157 : vector<8xf32> to vector<8x1xf32>
    %159 = vector.broadcast %57 : vector<1x1xf32> to vector<8x1xf32>
    %160 = arith.addf %158, %159 : vector<8x1xf32>
    %161 = arith.mulf %151, %149 : vector<8x32xf32>
    %cst_40 = arith.constant dense<0.000000e+00> : vector<8xf32>
    %162 = vector.multi_reduction <add>, %161, %cst_40 [1] : vector<8x32xf32> to vector<8xf32>
    %163 = vector.shape_cast %162 : vector<8xf32> to vector<8x1xf32>
    %164 = vector.broadcast %57 : vector<1x1xf32> to vector<8x1xf32>
    %165 = arith.addf %163, %164 : vector<8x1xf32>
    %166 = arith.mulf %152, %149 : vector<8x32xf32>
    %cst_41 = arith.constant dense<0.000000e+00> : vector<8xf32>
    %167 = vector.multi_reduction <add>, %166, %cst_41 [1] : vector<8x32xf32> to vector<8xf32>
    %168 = vector.shape_cast %167 : vector<8xf32> to vector<8x1xf32>
    %169 = vector.broadcast %57 : vector<1x1xf32> to vector<8x1xf32>
    %170 = arith.addf %168, %169 : vector<8x1xf32>
    %171 = arith.mulf %153, %149 : vector<8x32xf32>
    %cst_42 = arith.constant dense<0.000000e+00> : vector<8xf32>
    %172 = vector.multi_reduction <add>, %171, %cst_42 [1] : vector<8x32xf32> to vector<8xf32>
    %173 = vector.shape_cast %172 : vector<8xf32> to vector<8x1xf32>
    %174 = vector.broadcast %57 : vector<1x1xf32> to vector<8x1xf32>
    %175 = arith.addf %173, %174 : vector<8x1xf32>
    %176 = arith.mulf %154, %149 : vector<8x32xf32>
    %cst_43 = arith.constant dense<0.000000e+00> : vector<8xf32>
    %177 = vector.multi_reduction <add>, %176, %cst_43 [1] : vector<8x32xf32> to vector<8xf32>
    %178 = vector.shape_cast %177 : vector<8xf32> to vector<8x1xf32>
    %179 = vector.broadcast %57 : vector<1x1xf32> to vector<8x1xf32>
    %180 = arith.addf %178, %179 : vector<8x1xf32>
    %181 = arith.mulf %155, %149 : vector<8x32xf32>
    %cst_44 = arith.constant dense<0.000000e+00> : vector<8xf32>
    %182 = vector.multi_reduction <add>, %181, %cst_44 [1] : vector<8x32xf32> to vector<8xf32>
    %183 = vector.shape_cast %182 : vector<8xf32> to vector<8x1xf32>
    %184 = vector.broadcast %57 : vector<1x1xf32> to vector<8x1xf32>
    %185 = arith.addf %183, %184 : vector<8x1xf32>
    %186 = arith.maximumf %160, %165 : vector<8x1xf32>
    %187 = arith.maximumf %186, %170 : vector<8x1xf32>
    %188 = arith.maximumf %187, %175 : vector<8x1xf32>
    %189 = arith.maximumf %188, %180 : vector<8x1xf32>
    %190 = arith.maximumf %189, %185 : vector<8x1xf32>
    %191 = arith.subf %160, %190 : vector<8x1xf32>
    %192 = math.exp %191 : vector<8x1xf32>
    %193 = arith.subf %165, %190 : vector<8x1xf32>
    %194 = math.exp %193 : vector<8x1xf32>
    %195 = arith.subf %170, %190 : vector<8x1xf32>
    %196 = math.exp %195 : vector<8x1xf32>
    %197 = arith.subf %175, %190 : vector<8x1xf32>
    %198 = math.exp %197 : vector<8x1xf32>
    %199 = arith.subf %180, %190 : vector<8x1xf32>
    %200 = math.exp %199 : vector<8x1xf32>
    %201 = arith.subf %185, %190 : vector<8x1xf32>
    %202 = math.exp %201 : vector<8x1xf32>
    %203 = arith.addf %192, %194 : vector<8x1xf32>
    %204 = arith.addf %203, %196 : vector<8x1xf32>
    %205 = arith.addf %204, %198 : vector<8x1xf32>
    %206 = arith.addf %205, %200 : vector<8x1xf32>
    %207 = arith.addf %206, %202 : vector<8x1xf32>
    %cst_45 = arith.constant 1.000000e+00 : f32
    %208 = vector.broadcast %cst_45 : f32 to vector<8x1xf32>
    %209 = arith.divf %208, %207 : vector<8x1xf32>
    %210 = arith.mulf %192, %209 : vector<8x1xf32>
    %211 = vector.broadcast %210 : vector<8x1xf32> to vector<8x32xf32>
    %212 = arith.mulf %211, %150 : vector<8x32xf32>
    %213 = arith.mulf %194, %209 : vector<8x1xf32>
    %214 = vector.broadcast %213 : vector<8x1xf32> to vector<8x32xf32>
    %215 = arith.mulf %214, %151 : vector<8x32xf32>
    %216 = arith.addf %212, %215 : vector<8x32xf32>
    %217 = arith.mulf %196, %209 : vector<8x1xf32>
    %218 = vector.broadcast %217 : vector<8x1xf32> to vector<8x32xf32>
    %219 = arith.mulf %218, %152 : vector<8x32xf32>
    %220 = arith.addf %216, %219 : vector<8x32xf32>
    %221 = arith.mulf %198, %209 : vector<8x1xf32>
    %222 = vector.broadcast %221 : vector<8x1xf32> to vector<8x32xf32>
    %223 = arith.mulf %222, %153 : vector<8x32xf32>
    %224 = arith.addf %220, %223 : vector<8x32xf32>
    %225 = arith.mulf %200, %209 : vector<8x1xf32>
    %226 = vector.broadcast %225 : vector<8x1xf32> to vector<8x32xf32>
    %227 = arith.mulf %226, %154 : vector<8x32xf32>
    %228 = arith.addf %224, %227 : vector<8x32xf32>
    %229 = arith.mulf %202, %209 : vector<8x1xf32>
    %230 = vector.broadcast %229 : vector<8x1xf32> to vector<8x32xf32>
    %231 = arith.mulf %230, %155 : vector<8x32xf32>
    %232 = arith.addf %228, %231 : vector<8x32xf32>
    %233 = arith.addf %146, %41 : vector<8x32xf32>
    %234 = arith.addf %233, %232 : vector<8x32xf32>
    %cst_46 = arith.constant 5.000000e-01 : f32
    %235 = vector.broadcast %cst_46 : f32 to vector<8x32xf32>
    %236 = arith.mulf %234, %235 : vector<8x32xf32>
    %c216 = arith.constant 216 : index
    %c0_47 = arith.constant 0 : index
    %237 = vector.load %arg4[%c216, %c0_47] : memref<248x128xf32, #tpu.memory_space<vmem>>, vector<32x128xf32>
    %c176 = arith.constant 176 : index
    %c0_48 = arith.constant 0 : index
    %238 = vector.load %arg4[%c176, %c0_48] : memref<248x128xf32, #tpu.memory_space<vmem>>, vector<32x128xf32>
    %c208 = arith.constant 208 : index
    %c0_49 = arith.constant 0 : index
    %239 = vector.load %arg4[%c208, %c0_49] : memref<248x128xf32, #tpu.memory_space<vmem>>, vector<1x128xf32>
    %cst_50 = arith.constant dense<0.000000e+00> : vector<8x128xf32>
    %240 = tpu.matmul %29, %237, %cst_50 {dimension_numbers = #tpu.dot_dimension_numbers<[1], [0], [0], [1], [0, 0, 1, 1], [], []>} : vector<8x32xf32>, vector<32x128xf32>, vector<8x128xf32> -> vector<8x128xf32>
    %cst_51 = arith.constant dense<0.000000e+00> : vector<8x128xf32>
    %241 = tpu.matmul %236, %238, %cst_51 {dimension_numbers = #tpu.dot_dimension_numbers<[1], [0], [0], [1], [0, 0, 1, 1], [], []>} : vector<8x32xf32>, vector<32x128xf32>, vector<8x128xf32> -> vector<8x128xf32>
    %242 = arith.addf %240, %241 : vector<8x128xf32>
    %243 = vector.broadcast %239 : vector<1x128xf32> to vector<8x128xf32>
    %244 = arith.addf %242, %243 : vector<8x128xf32>
    %c0_52 = arith.constant 0 : index
    %c0_53 = arith.constant 0 : index
    %245 = vector.load %arg5[%c0_52, %c0_53] : memref<8x128xf32, #tpu.memory_space<vmem>>, vector<8x128xf32>
    tpu.vector_store %arg5[%c0_52, %c0_53], %244 {strides = array<i32>} : memref<8x128xf32, #tpu.memory_space<vmem>>, vector<8x128xf32>,
    return
  }
}

</mosaic_0001>

<bundles_post_ra>
// kernel: gnn_forward.1
= control target key start
LH: loop header
LB: loop body
LE: loop exit
PB: predicated region body
PF: predicated region fallthrough
CT: control target
= control target key end

     0   :  { %vm39_vm0 = vcmask 1043456   ;;  %vm29_vm1 = vcmask 162816   ;;  %vm70_vm2 = vcmask 130048   ;;  %vm312_vm3 = vcmask 326656   ;;  %s1491_s2 = inlined_call_operand.vmem [shape: f32[20,16], index: 2, kind: input, shape index: {}]   ;;  %s1492_s0 = inlined_call_operand.vmem [shape: f32[20,20], index: 0, kind: input, shape index: {}]   ;;  %s1493_s4 = inlined_call_operand.vmem [shape: f32[248,128], index: 4, kind: input, shape index: {}]   ;;  %s1494_s3 = inlined_call_operand.vmem [shape: s32[128,1], index: 3, kind: input, shape index: {}]   ;;  %s1495_s1 = inlined_call_operand.vmem [shape: f32[8,20], index: 1, kind: input, shape index: {}]   ;;  %s1496_s5 = inlined_call_operand.vmem [shape: f32[8,128], index: 5, kind: output, shape index: {}]  }
   0x1   :  { %v25_v0 = vld [vmem:[%s1491_s2 + $0x10] sm:$0xf]  ;;  %v24_v1 = vld [vmem:[%s1491_s2 + $0x8] sm:$0xff]  ;;  %v23_v2 = vld [vmem:[%s1491_s2] sm:$0xff]  ;;  %v1051_v21 = vmov 0   ;;  %vm144_vm4 = vcmask 261120  }
   0x2   :  { %921 = vmatpush.msk.msra.mxu0 %vm39_vm0, %v25_v0  ;;  %v1097_v3 = vld [vmem:[%s1492_s0] sm:$0xff]  ;;  %v27_v4 = vld [vmem:[%s1493_s4 + $0x8] sm:$0xff]  ;;  %v1114_v6 = vld [vmem:[%s1492_s0 + $0x10] sm:$0xf]  ;;  %1005 = vset.pattern.permute.xlu0 %v1051_v21  ;;  %vm486_vm7 = vcmask 457728  }
   0x3   :  { %94 = vmatpush.msra.mxu1 %v27_v4  ;;  %v1107_v5 = vld [vmem:[%s1492_s0 + $0x8] sm:$0xff]  ;;  %v26_v7 = vld [vmem:[%s1493_s4] sm:$0xff]  ;;  %v311_v11 = vld [vmem:[%s1493_s4 + $0x98] sm:$0xff]  ;;  %1006 = vset.pattern.permute.xlu1 %v1051_v21 }
   0x4   :  { %57 = vmatpush.msra.mxu0 %v24_v1  ;;  %v310_v12 = vld [vmem:[%s1493_s4 + $0x90] sm:$0xff]  ;;  %v309_v13 = vld [vmem:[%s1493_s4 + $0x88] sm:$0xff]  ;;  %v308_v14 = vld [vmem:[%s1493_s4 + $0x80] sm:$0xff]  ;;  %1007 = vset.pattern.permute.xlu2 %v1051_v21 }
   0x5   :  { %95 = vmatpush.msra.mxu1 %v26_v7  ;;  %v307_v15 = vld [vmem:[%s1493_s4 + $0x78] sm:$0xff]  ;;  %v300_v16 = vld [vmem:[%s1493_s4 + $0x40] sm:$0xff]  ;;  %v301_v17 = vld [vmem:[%s1493_s4 + $0x48] sm:$0xff]  ;;  %v1052_v7 = vmov 0.0  }
   0x6   :  { %58 = vmatpush.msra.mxu0 %v23_v2  ;;  %v302_v19 = vld [vmem:[%s1493_s4 + $0x50] sm:$0xff]  ;;  %v377_v22 = vld [vmem:[%s1494_s3 + $0x18] sm:$0xff]  ;;  %v379_v23 = vld [vmem:[%s1494_s3 + $0x28] sm:$0xff]  ;;  %v372_v2 = vlaneseq }
   0x7   :  { %922 = vmatmul.msk.f32.vlgmr.msra.gmra.mxu0 %vm29_vm1, %v1097_v3  ;;  %400 = vperm.xlu0 %1005, %v377_v22   ;;  %v384_v24 = vld [vmem:[%s1494_s3 + $0x50] sm:$0xff]  ;;  %v303_v25 = vld [vmem:[%s1493_s4 + $0x58] sm:$0xff]  ;;  %v378_v30 = vld [vmem:[%s1494_s3 + $0x20] sm:$0xff] }
   0x8   :  { %345 = vmatpush.msrb.mxu0 %v311_v11  ;;  %406 = vperm.xlu1 %1006, %v379_v23   ;;  %v1008_v26 = vld [vmem:[%s1493_s4 + $0x10] ss:$0 sm:$0xff]  ;;  %v304_v35 = vld [vmem:[%s1493_s4 + $0x60] sm:$0xff]  ;;  %v385_v37 = vld [vmem:[%s1494_s3 + $0x58] sm:$0xff] }
   0x9   :  { %421 = vperm.xlu2 %1007, %v384_v24   ;;  %v380_v31 = vld [vmem:[%s1494_s3 + $0x30] sm:$0xff]  ;;  %v382_v38 = vld [vmem:[%s1494_s3 + $0x40] sm:$0xff]  ;;  %v305_v39 = vld [vmem:[%s1493_s4 + $0x68] sm:$0xff] }
   0xa   :  { %346 = vmatpush.msrb.mxu0 %v310_v12  ;;  %v386_v40 = vld [vmem:[%s1494_s3 + $0x60] sm:$0xff]  ;;  %v383_v41 = vld [vmem:[%s1494_s3 + $0x48] sm:$0xff]  ;;  %v306_v42 = vld [vmem:[%s1493_s4 + $0x70] sm:$0xff] }
   0xb   :  { %v387_v43 = vld [vmem:[%s1494_s3 + $0x68] sm:$0xff]  ;;  %v112_v44 = vld [vmem:[%s1493_s4 + $0x30] sm:$0xff]  ;;  %v110_v47 = vld [vmem:[%s1493_s4 + $0x20] sm:$0xff] }
   0xc   :  { %347 = vmatpush.msrb.mxu0 %v309_v13  ;;  %v111_v45 = vld [vmem:[%s1493_s4 + $0x28] sm:$0xff]  ;;  %166 = vmatpush.msrb.mxu1 %v112_v44  ;;  %v388_v46 = vld [vmem:[%s1494_s3 + $0x70] sm:$0xff]  ;;  %v109_v49 = vld [vmem:[%s1493_s4 + $0x18] sm:$0xff] }
   0xd   :  { %978 = vmatpush.msra.mxu3 %v112_v44  ;;  %v389_v51 = vld [vmem:[%s1494_s3 + $0x78] sm:$0xff]  ;;  %v374_v55 = vld [vmem:[%s1494_s3] sm:$0xff]  ;;  %v375_v57 = vld [vmem:[%s1494_s3 + $0x8] sm:$0xff] }
   0xe   :  { %348 = vmatpush.msrb.mxu0 %v308_v14  ;;  %167 = vmatpush.msrb.mxu1 %v111_v45  ;;  %v381_v54 = vld [vmem:[%s1494_s3 + $0x38] sm:$0xff]  ;;  %v376_v62 = vld [vmem:[%s1494_s3 + $0x10] sm:$0xff] }
   0xf   :  { %923 = vmatmul.msk.f32.gmra.mxu0 %vm29_vm1, %v1107_v5  ;;  %403 = vperm.xlu0 %1005, %v378_v30  }
  0x10   :  { %349 = vmatpush.msrb.mxu0 %v307_v15  ;;  %409 = vperm.xlu1 %1006, %v380_v31  }
  0x11   :  { %979 = vmatpush.msra.mxu3 %v111_v45  ;;  %168 = vmatpush.msrb.mxu1 %v110_v47 }
  0x12   :  { %412 = vperm.xlu2 %1007, %v381_v54  }
  0x13   :  { %980 = vmatpush.msra.mxu3 %v110_v47  ;;  %169 = vmatpush.msrb.mxu1 %v109_v49 }
  0x15   :  { %981 = vmatpush.msra.mxu3 %v109_v49 }
  0x17   :  { %924 = vmatmul.msk.f32.gmra.mxu0 %vm29_vm1, %v1114_v6  ;;  %424 = vperm.xlu0 %1005, %v385_v37  }
  0x18   :  { %415 = vperm.xlu1 %1006, %v382_v38  }
  0x1a   :  { %391 = vperm.xlu2 %1007, %v374_v55  }
  0x1f   :  { %937 = vmatmul.msk.f32.vlgmr.msrb.gmra.mxu0 %vm312_vm3, %v300_v16  ;;  %427 = vperm.xlu0 %1005, %v386_v40  }
  0x20   :  { %418 = vperm.xlu1 %1006, %v383_v41  }
  0x22   :  { %394 = vperm.xlu2 %1007, %v375_v57  }
  0x27   :  { %938 = vmatmul.msk.f32.gmra.mxu0 %vm312_vm3, %v301_v17  ;;  %430 = vperm.xlu0 %1005, %v387_v43  }
  0x28   :  { %433 = vperm.xlu1 %1006, %v388_v46  }
  0x2a   :  { %397 = vperm.xlu2 %1007, %v376_v62  }
  0x2f   :  { %939 = vmatmul.msk.f32.gmra.mxu0 %vm312_vm3, %v302_v19  ;;  %436 = vperm.xlu0 %1005, %v389_v51  }
  0x37   :  { %940 = vmatmul.msk.f32.gmra.mxu0 %vm312_vm3, %v303_v25 }
  0x3f   :  { %941 = vmatmul.msk.f32.gmra.mxu0 %vm312_vm3, %v304_v35 }
  0x47   :  { %942 = vmatmul.msk.f32.gmra.mxu0 %vm312_vm3, %v305_v39 }
  0x4f   :  { %943 = vmatmul.msk.f32.gmra.mxu0 %vm312_vm3, %v306_v42  ;;  %v271_v42 = vld [vmem:[%s1495_s1] sm:$0xff] }
  0x79   :  { %v401_v59 = vpop.permute.xlu0 %400 }
  0x7a   :  { %v407_v63 = vpop.permute.xlu1 %406 }
  0x81   :  { %v404_v1 = vpop.permute.xlu0 %403 }
  0x84   :  { %v60_v8 = vpop.f32.mrf.mxu0 }
  0x85   :  { %925 = vmatmul.msk.f32.vlgmr.msra.gmra.mxu1 %vm70_vm2, %v60_v8 }
  0x8c   :  { %v63_v9 = vpop.f32.mrf.mxu0 }
  0x8d   :  { %926 = vmatmul.msk.f32.gmra.mxu1 %vm70_vm2, %v63_v9  ;;  %v425_v9 = vpop.permute.xlu0 %424 }
  0x94   :  { %v66_v10 = vpop.f32.mrf.mxu0 }
  0x95   :  { %927 = vmatmul.msk.f32.gmra.mxu1 %vm70_vm2, %v66_v10  ;;  %v428_v14 = vpop.permute.xlu0 %427 }
  0x9c   :  { %v1216_v48 = vpop.f32.mrf.mxu0 }
  0xa4   :  { %v1221_v50 = vpop.f32.mrf.mxu0 }
  0xac   :  { %v1226_v52 = vpop.f32.mrf.mxu0 }
  0xb4   :  { %v1228_v53 = vpop.f32.mrf.mxu0 }
  0xbc   :  { %v1236_v56 = vpop.f32.mrf.mxu0 }
  0xc4   :  { %v1242_v60 = vpop.f32.mrf.mxu0 }
  0xcc   :  { %v1248_v0 = vpop.f32.mrf.mxu0 }
  0xcd   :  { %983 = vmatpush.msrb.mxu3 %v1248_v0 }
  0xcf   :  { %985 = vmatpush.msrb.mxu3 %v1242_v60 }
  0xd1   :  { %987 = vmatpush.msrb.mxu3 %v1236_v56 }
  0xd3   :  { %989 = vmatpush.msrb.mxu3 %v1228_v53 }
  0xd5   :  { %991 = vmatpush.msrb.mxu3 %v1226_v52 }
  0xd7   :  { %993 = vmatpush.msrb.mxu3 %v1221_v50 }
  0xd9   :  { %995 = vmatpush.msrb.mxu3 %v1216_v48 }
 0x102   :  { %v97_v18 = vpop.f32.mrf.mxu1 }
 0x103   :  { %v98_v32 = vadd.f32 %v1008_v26, %v97_v18  ;;  %v431_v18 = vpop.permute.xlu0 %430 }
 0x105   :  { %v106_v36 = vmax.f32 %v98_v32, 0.0 }
 0x10a   :  { %v100_v20 = vpop.f32.mrf.mxu1 }
 0x10b   :  { %v101_v28 = vadd.f32 %v1008_v26, %v100_v20 }
 0x10d   :  { %v107_v34 = vmax.f32 %v101_v28, 0.0 }
 0x112   :  { %v103_v27 = vpop.f32.mrf.mxu1 }
 0x113   :  { %v104_v29 = vadd.f32 %v1008_v26, %v103_v27  ;;  %v437_v26 = vpop.permute.xlu0 %436 }
 0x115   :  { %v108_v33 = vmax.f32 %v104_v29, 0.0  ;;  %v1009_v29 = vld [vmem:[%s1493_s4 + $0x38] ss:$0 sm:$0xff] }
 0x117   :  { %928 = vmatpush.msk.msra.mxu2 %vm39_vm0, %v108_v33 }
 0x119   :  { %131 = vmatpush.msra.mxu2 %v107_v34 }
 0x11b   :  { %132 = vmatpush.msra.mxu2 %v106_v36 }
 0x11c   :  { %929 = vmatmul.msk.f32.vlgmr.msra.gmra.mxu2 %vm29_vm1, %v1097_v3  ;;  %v1256_v3 = vand.u32 127, %v372_v2 }
 0x11d   :  { %982 = vmatpush.msrb.mxu2 %v1248_v0 }
 0x11e   :  { %vm441_vm5 = vcmp.eq.s32.totalorder %v401_v59, %v1256_v3  ;;  %vm442_vm8 = vcmp.eq.s32.totalorder %v404_v1, %v1256_v3  ;;  %vm449_vm9 = vcmp.eq.s32.totalorder %v425_v9, %v1256_v3  ;;  %vm443_vm10 = vcmp.eq.s32.totalorder %v407_v63, %v1256_v3 }
 0x11f   :  { %984 = vmatpush.msrb.mxu2 %v1242_v60  ;;  %v947_v8 = vsel %vm441_vm5, 1.0, %v1052_v7  ;;  %v948_v11 = vsel %vm442_vm8, 1.0, %v1052_v7  ;;  %v955_v13 = vsel %vm449_vm9, 1.0, %v1052_v7  ;;  %vm450_vm11 = vcmp.eq.s32.totalorder %v428_v14, %v1256_v3 }
 0x120   :  { %v949_v15 = vsel %vm443_vm10, 1.0, %v1052_v7  ;;  %v956_v16 = vsel %vm450_vm11, 1.0, %v1052_v7  ;;  %vm451_vm13 = vcmp.eq.s32.totalorder %v431_v18, %v1256_v3  ;;  %vm453_vm3 = vcmp.eq.s32.totalorder %v437_v26, %v1256_v3 }
 0x121   :  { %986 = vmatpush.msrb.mxu2 %v1236_v56  ;;  %v957_v20 = vsel %vm451_vm13, 1.0, %v1052_v7  ;;  %v959_v27 = vsel %vm453_vm3, 1.0, %v1052_v7 }
 0x123   :  { %988 = vmatpush.msrb.mxu2 %v1228_v53 }
 0x124   :  { %930 = vmatmul.msk.f32.gmra.mxu2 %vm29_vm1, %v1107_v5  ;;  %v422_v5 = vpop.permute.xlu2 %421 }
 0x125   :  { %990 = vmatpush.msrb.mxu2 %v1226_v52  ;;  %vm448_vm6 = vcmp.eq.s32.totalorder %v422_v5, %v1256_v3 }
 0x126   :  { %v954_v10 = vsel %vm448_vm6, 1.0, %v1052_v7  ;;  %vm189_vm6 = vcmask 257024  }
 0x127   :  { %992 = vmatpush.msrb.mxu2 %v1221_v50 }
 0x129   :  { %994 = vmatpush.msrb.mxu2 %v1216_v48 }
 0x12c   :  { %931 = vmatmul.msk.f32.gmra.mxu2 %vm29_vm1, %v1114_v6  ;;  %v410_v6 = vpop.permute.xlu1 %409  ;;  %v413_v23 = vpop.permute.xlu2 %412 }
 0x12d   :  { %vm444_vm12 = vcmp.eq.s32.totalorder %v410_v6, %v1256_v3  ;;  %vm445_vm15 = vcmp.eq.s32.totalorder %v413_v23, %v1256_v3 }
 0x12e   :  { %v950_v19 = vsel %vm444_vm12, 1.0, %v1052_v7  ;;  %v951_v24 = vsel %vm445_vm15, 1.0, %v1052_v7  ;;  %vm229_vm12 = vcmask 7168  }
 0x134   :  { %963 = vmatmul.msk.f32.vlgmr.msrb.gmra.mxu2 %vm486_vm7, %v947_v8  ;;  %v416_v12 = vpop.permute.xlu1 %415  ;;  %v392_v43 = vpop.permute.xlu2 %391 }
 0x135   :  { %vm446_vm2 = vcmp.eq.s32.totalorder %v416_v12, %v1256_v3 }
 0x136   :  { %v952_v25 = vsel %vm446_vm2, 1.0, %v1052_v7 }
 0x13c   :  { %964 = vmatmul.msk.f32.gmra.mxu2 %vm486_vm7, %v948_v11  ;;  %v419_v17 = vpop.permute.xlu1 %418  ;;  %v395_v45 = vpop.permute.xlu2 %394 }
 0x13d   :  { %vm447_vm5 = vcmp.eq.s32.totalorder %v419_v17, %v1256_v3 }
 0x13e   :  { %v953_v28 = vsel %vm447_vm5, 1.0, %v1052_v7 }
 0x144   :  { %965 = vmatmul.msk.f32.gmra.mxu2 %vm486_vm7, %v949_v15  ;;  %v434_v21 = vpop.permute.xlu1 %433  ;;  %v398_v47 = vpop.permute.xlu2 %397 }
 0x145   :  { %vm452_vm14 = vcmp.eq.s32.totalorder %v434_v21, %v1256_v3  ;;  %vm440_vm8 = vcmp.eq.s32.totalorder %v398_v47, %v1256_v3 }
 0x146   :  { %v958_v22 = vsel %vm452_vm14, 1.0, %v1052_v7  ;;  %v946_v49 = vsel %vm440_vm8, 1.0, %v1052_v7  ;;  %vm233_vm14 = vcmask 3072  }
 0x14c   :  { %966 = vmatmul.msk.f32.gmra.mxu2 %vm486_vm7, %v950_v19 }
 0x154   :  { %967 = vmatmul.msk.f32.gmra.mxu2 %vm486_vm7, %v951_v24 }
 0x15c   :  { %968 = vmatmul.msk.f32.gmra.mxu2 %vm486_vm7, %v952_v25 }
 0x164   :  { %969 = vmatmul.msk.f32.gmra.mxu2 %vm486_vm7, %v953_v28 }
 0x19f   :  { %v134_v58 = vpop.f32.mrf.mxu2 }
 0x1a0   :  { %932 = vmatmul.msk.f32.vlgmr.msrb.gmra.mxu1 %vm144_vm4, %v134_v58 }
 0x1a7   :  { %v137_v61 = vpop.f32.mrf.mxu2 }
 0x1a8   :  { %933 = vmatmul.msk.f32.vlgmr.msra.gmra.mxu3 %vm144_vm4, %v137_v61 }
 0x1af   :  { %v140_v4 = vpop.f32.mrf.mxu2 }
 0x1b0   :  { %934 = vmatmul.msk.f32.gmra.mxu3 %vm144_vm4, %v140_v4 }
 0x1b8   :  { %970 = vmatmul.msk.f32.vlgmr.msrb.gmra.mxu3 %vm486_vm7, %v954_v10 }
 0x1c0   :  { %971 = vmatmul.msk.f32.gmra.mxu3 %vm486_vm7, %v955_v13 }
 0x1c8   :  { %972 = vmatmul.msk.f32.gmra.mxu3 %vm486_vm7, %v956_v16 }
 0x1d0   :  { %973 = vmatmul.msk.f32.gmra.mxu3 %vm486_vm7, %v957_v20 }
 0x1d8   :  { %974 = vmatmul.msk.f32.gmra.mxu3 %vm486_vm7, %v958_v22 }
 0x1e0   :  { %975 = vmatmul.msk.f32.gmra.mxu3 %vm486_vm7, %v959_v27 }
 0x21d   :  { %v171_v30 = vpop.f32.mrf.mxu1 }
 0x21e   :  { %v172_v31 = vadd.f32 %v1009_v29, %v171_v30 }
 0x220   :  { %v180_v32 = vmul.f32 %v172_v31, %v172_v31 }
 0x222   :  { %v183_v33 = vsel %vm144_vm4, %v180_v32, 0.0 }
 0x223   :  { %184 = vadd.xlane.f32.xlu1 %v183_v33 }
 0x22b   :  { %v174_v34 = vpop.f32.mrf.mxu3 }
 0x22c   :  { %v175_v35 = vadd.f32 %v1009_v29, %v174_v34 }
 0x22e   :  { %v181_v36 = vmul.f32 %v175_v35, %v175_v35 }
 0x230   :  { %v186_v37 = vsel %vm144_vm4, %v181_v36, 0.0 }
 0x231   :  { %187 = vadd.xlane.f32.xlu2 %v186_v37 }
 0x233   :  { %v177_v38 = vpop.f32.mrf.mxu3 }
 0x234   :  { %v178_v39 = vadd.f32 %v1009_v29, %v177_v38 }
 0x236   :  { %935 = vmatpush.msk.msra.mxu1 %vm39_vm0, %v178_v39  ;;  %v182_v40 = vmul.f32 %v178_v39, %v178_v39  ;;  %vm438_vm0 = vcmp.eq.s32.totalorder %v392_v43, %v1256_v3 }
 0x237   :  { %v944_v44 = vsel %vm438_vm0, 1.0, %v1052_v7 }
 0x238   :  { %292 = vmatpush.msra.mxu1 %v175_v35  ;;  %v190_v41 = vsel %vm189_vm6, %v182_v40, 0.0 }
 0x239   :  { %191 = vadd.xlane.f32.xlu0 %v190_v41  ;;  %v1010_v41 = vld [vmem:[%s1493_s4 + $0xa0] ss:$0 sm:$0xff] }
 0x23a   :  { %293 = vmatpush.msra.mxu1 %v172_v31 }
 0x23b   :  { %936 = vmatmul.msk.f32.vlgmr.msra.gmra.mxu1 %vm29_vm1, %v271_v42  ;;  %vm439_vm1 = vcmp.eq.s32.totalorder %v395_v45, %v1256_v3  ;;  %v1342_v15 = vpop.f32.mrf.mxu3 }
 0x23c   :  { %544 = vmatpush.msrb.mxu1 %v1248_v0  ;;  %v945_v46 = vsel %vm439_vm1, 1.0, %v1052_v7 }
 0x23e   :  { %545 = vmatpush.msrb.mxu1 %v1242_v60 }
 0x240   :  { %546 = vmatpush.msrb.mxu1 %v1236_v56 }
 0x242   :  { %547 = vmatpush.msrb.mxu1 %v1228_v53 }
 0x243   :  { %v1348_v31 = vpop.f32.mrf.mxu3 }
 0x244   :  { %548 = vmatpush.msrb.mxu1 %v1226_v52 }
 0x246   :  { %549 = vmatpush.msrb.mxu1 %v1221_v50  ;;  %v1332_v50 = vpop.f32.mrf.mxu2 }
 0x248   :  { %550 = vmatpush.msrb.mxu1 %v1216_v48 }
 0x249   :  { %960 = vmatmul.msk.f32.vlgmr.msrb.gmra.mxu1 %vm486_vm7, %v944_v44 }
 0x24b   :  { %v1354_v37 = vpop.f32.mrf.mxu3 }
 0x24e   :  { %v1334_v48 = vpop.f32.mrf.mxu2 }
 0x251   :  { %961 = vmatmul.msk.f32.gmra.mxu1 %vm486_vm7, %v945_v46 }
 0x256   :  { %v1336_v55 = vpop.f32.mrf.mxu2 }
 0x259   :  { %962 = vmatmul.msk.f32.gmra.mxu1 %vm486_vm7, %v946_v49 }
 0x25e   :  { %v1338_v63 = vpop.f32.mrf.mxu2 }
 0x266   :  { %v1340_v11 = vpop.f32.mrf.mxu2 }
 0x26e   :  { %v1346_v29 = vpop.f32.mrf.mxu2 }
 0x276   :  { %v579_v34 = vpop.f32.mrf.mxu2 }
 0x296   :  { %v185_v51 = vpop.xlane.xlu1 %184 }
 0x297   :  { %1013 = vrsqrt.f32 %v185_v51  ;;  %vm200_vm9 = vcmp.eq.f32.partialorder %v185_v51, inf  ;;  %v203_v17 = vand.u32 2147483648, %v185_v51  ;;  %vm202_vm11 = vcmp.eq.f32.partialorder %v185_v51, 0.0 }
 0x29d   :  { %v1014_v52 = vpop.eup %1013 }
 0x29e   :  { %v194_v53 = vmul.f32 %v1014_v52, %v185_v51 }
 0x2a0   :  { %v195_v56 = vmul.f32 %v1014_v52, %v194_v53 }
 0x2a2   :  { %v196_v57 = vmul.f32 0.5, %v195_v56 }
 0x2a4   :  { %v188_v54 = vpop.xlane.xlu2 %187  ;;  %v197_v61 = vsub.f32 1.5, %v196_v57 }
 0x2a5   :  { %1015 = vrsqrt.f32 %v188_v54  ;;  %vm212_vm7 = vcmp.eq.f32.partialorder %v188_v54, inf  ;;  %v215_v12 = vand.u32 2147483648, %v188_v54  ;;  %vm214_vm10 = vcmp.eq.f32.partialorder %v188_v54, 0.0 }
 0x2a6   :  { %v198_v1 = vmul.f32 %v1014_v52, %v197_v61 }
 0x2a8   :  { %v199_v6 = vmul.f32 %v198_v1, %v185_v51 }
 0x2aa   :  { %v201_v13 = vsel %vm200_vm9, %v185_v51, %v199_v6  ;;  %v1366_v51 = vpop.f32.mrf.mxu3 }
 0x2ab   :  { %v1016_v58 = vpop.eup %1015  ;;  %v204_v20 = vsel %vm202_vm11, %v203_v17, %v201_v13  ;;  %v1053_v17 = vmov 20.0  }
 0x2ac   :  { %v206_v59 = vmul.f32 %v1016_v58, %v188_v54  ;;  %v192_v60 = vpop.xlane.xlu0 %191  ;;  %v230_v25 = vsel %vm229_vm12, %v204_v20, 0.0 }
 0x2ad   :  { %1017 = vrsqrt.f32 %v192_v60  ;;  %vm224_vm13 = vcmp.eq.f32.partialorder %v192_v60, inf  ;;  %v227_v23 = vand.u32 2147483648, %v192_v60  ;;  %vm226_vm15 = vcmp.eq.f32.partialorder %v192_v60, 0.0 }
 0x2ae   :  { %v207_v62 = vmul.f32 %v1016_v58, %v206_v59  ;;  %1019 = vrcp.f32 %v1053_v17 }
 0x2b0   :  { %v208_v0 = vmul.f32 0.5, %v207_v62 }
 0x2b2   :  { %v209_v2 = vsub.f32 1.5, %v208_v0  ;;  %v1376_v62 = vpop.f32.mrf.mxu3 }
 0x2b3   :  { %v1018_v3 = vpop.eup %1017 }
 0x2b4   :  { %v218_v4 = vmul.f32 %v1018_v3, %v192_v60  ;;  %v210_v5 = vmul.f32 %v1016_v58, %v209_v2 }
 0x2b6   :  { %v211_v7 = vmul.f32 %v210_v5, %v188_v54  ;;  %v219_v8 = vmul.f32 %v1018_v3, %v218_v4 }
 0x2b8   :  { %v213_v9 = vsel %vm212_vm7, %v188_v54, %v211_v7  ;;  %v220_v10 = vmul.f32 0.5, %v219_v8  ;;  %v1344_v16 = vpop.f32.mrf.mxu1 }
 0x2b9   :  { %v216_v18 = vsel %vm214_vm10, %v215_v12, %v213_v9 }
 0x2ba   :  { %v221_v14 = vsub.f32 1.5, %v220_v10  ;;  %v231_v22 = vsel %vm229_vm12, %v216_v18, 0.0  ;;  %v1385_v7 = vpop.f32.mrf.mxu3  ;;  %v1020_v18 = vpop.eup %1019 }
 0x2bb   :  { %v232_v27 = vadd.f32 %v231_v22, %v230_v25  ;;  %vm250_vm2 = vweird.f32 %v1020_v18 }
 0x2bc   :  { %v222_v19 = vmul.f32 %v1018_v3, %v221_v14 }
 0x2be   :  { %v223_v21 = vmul.f32 %v222_v19, %v192_v60  ;;  %v246_v19 = vmul.f32 20.0, %v1020_v18 }
 0x2c0   :  { %v225_v24 = vsel %vm224_vm13, %v192_v60, %v223_v21  ;;  %v247_v20 = vsub.f32 1.0, %v246_v19 }
 0x2c1   :  { %v228_v26 = vsel %vm226_vm15, %v227_v23, %v225_v24 }
 0x2c2   :  { %v234_v28 = vsel %vm233_vm14, %v228_v26, 0.0  ;;  %v248_v24 = vmul.f32 %v1020_v18, %v247_v20 }
 0x2c3   :  { %v235_v30 = vadd.f32 %v234_v28, %v232_v27 }
 0x2c4   :  { %v249_v27 = vadd.f32 %v1020_v18, %v248_v24 }
 0x2c5   :  { %236 = vadd.xlane.f32.xlu2 %v235_v30 }
 0x2c6   :  { %v1350_v32 = vpop.f32.mrf.mxu1 }
 0x2c7   :  { %v601_v33 = vadd.f32 %v1346_v29, %v1350_v32 }
 0x2c9   :  { %v602_v38 = vmul.f32 0.5, %v601_v33  ;;  %v251_v33 = vsel %vm250_vm2, %v1020_v18, %v249_v27 }
 0x2ce   :  { %v555_v35 = vpop.f32.mrf.mxu1 }
 0x2cf   :  { %v604_v36 = vadd.f32 %v579_v34, %v555_v35 }
 0x2d1   :  { %v605_v39 = vmul.f32 0.5, %v604_v36 }
 0x2d3   :  { %v606_v40 = vadd.f32 %v605_v39, %v602_v38  ;;  %v1011_v38 = vld [vmem:[%s1493_s4 + $0xa8] ss:$0 sm:$0xff] }
 0x2d5   :  { %v609_v42 = vmul.f32 %v606_v40, %v1350_v32  ;;  %v734_v44 = vmul.f32 %v606_v40, %v1346_v29 }
 0x2d6   :  { %v1361_v45 = vpop.f32.mrf.mxu1 }
 0x2d7   :  { %v611_v43 = vmul.f32 %v1010_v41, %v609_v42  ;;  %v735_v52 = vmul.f32 %v1010_v41, %v734_v44 }
 0x2d9   :  { %v612_v46 = vmul.f32 %v611_v43, %v1361_v45  ;;  %v623_v47 = vmul.f32 %v611_v43, %v1334_v48  ;;  %v618_v49 = vmul.f32 %v611_v43, %v1332_v50  ;;  %v628_v57 = vmul.f32 %v611_v43, %v1336_v55 }
 0x2da   :  { %v741_v58 = vmul.f32 %v735_v52, %v1348_v31  ;;  %v736_v59 = vmul.f32 %v735_v52, %v1342_v15  ;;  %v633_v1 = vmul.f32 %v611_v43, %v1338_v63  ;;  %v638_v2 = vmul.f32 %v611_v43, %v1340_v11 }
 0x2db   :  { %v613_v53 = vsel %vm144_vm4, %v612_v46, 0.0  ;;  %v624_v54 = vsel %vm144_vm4, %v623_v47, 0.0  ;;  %v619_v56 = vsel %vm144_vm4, %v618_v49, 0.0  ;;  %v629_v60 = vsel %vm144_vm4, %v628_v57, 0.0 }
 0x2dc   :  { %614 = vadd.xlane.f32.xlu1 %v613_v53  ;;  %625 = vadd.xlane.f32.xlu0 %v624_v54  ;;  %v742_v61 = vsel %vm144_vm4, %v741_v58, 0.0  ;;  %v737_v0 = vsel %vm144_vm4, %v736_v59, 0.0  ;;  %v746_v3 = vmul.f32 %v735_v52, %v1354_v37  ;;  %v634_v4 = vsel %vm144_vm4, %v633_v1, 0.0 }
 0x2dd   :  { %620 = vadd.xlane.f32.xlu2 %v619_v56  ;;  %v639_v5 = vsel %vm144_vm4, %v638_v2, 0.0  ;;  %v751_v8 = vmul.f32 %v735_v52, %v1366_v51  ;;  %v761_v9 = vmul.f32 %v735_v52, %v1385_v7  ;;  %v756_v10 = vmul.f32 %v735_v52, %v1376_v62 }
 0x2de   :  { %v747_v6 = vsel %vm144_vm4, %v746_v3, 0.0 }
 0x2df   :  { %v752_v12 = vsel %vm144_vm4, %v751_v8, 0.0  ;;  %v762_v13 = vsel %vm144_vm4, %v761_v9, 0.0  ;;  %v757_v14 = vsel %vm144_vm4, %v756_v10, 0.0 }
 0x2e4   :  { %630 = vadd.xlane.f32.xlu1 %v629_v60  ;;  %743 = vadd.xlane.f32.xlu0 %v742_v61 }
 0x2e5   :  { %738 = vadd.xlane.f32.xlu2 %v737_v0 }
 0x2ec   :  { %635 = vadd.xlane.f32.xlu1 %v634_v4  ;;  %640 = vadd.xlane.f32.xlu0 %v639_v5 }
 0x2ed   :  { %748 = vadd.xlane.f32.xlu2 %v747_v6 }
 0x2f4   :  { %753 = vadd.xlane.f32.xlu1 %v752_v12  ;;  %763 = vadd.xlane.f32.xlu0 %v762_v13 }
 0x2f5   :  { %758 = vadd.xlane.f32.xlu2 %v757_v14 }
 0x338   :  { %v237_v21 = vpop.xlane.xlu2 %236 }
 0x339   :  { %v238_v22 = vrot.slane %v237_v21, 4 }
 0x33b   :  { %v239_v23 = vadd.f32 %v238_v22, %v237_v21 }
 0x33d   :  { %v240_v25 = vrot.slane %v239_v23, 2 }
 0x33f   :  { %v241_v26 = vadd.f32 %v240_v25, %v239_v23 }
 0x341   :  { %v242_v28 = vrot.slane %v241_v26, 1 }
 0x343   :  { %v243_v30 = vadd.f32 %v242_v28, %v241_v26 }
 0x345   :  { %996 = vpush %v243_v30 }
 0x346   :  { %998 = vpush %v251_v33 }
 0x34f   :  { %v615_v34 = vpop.xlane.xlu1 %614  ;;  %v626_v35 = vpop.xlane.xlu0 %625 }
 0x350   :  { %v621_v36 = vpop.xlane.xlu2 %620  ;;  %v617_v39 = vadd.f32 %v1011_v38, %v615_v34  ;;  %v627_v46 = vadd.f32 %v1011_v38, %v626_v35 }
 0x351   :  { %v622_v40 = vadd.f32 %v1011_v38, %v621_v36 }
 0x353   :  { %v643_v44 = vmax.f32 %v617_v39, %v622_v40 }
 0x355   :  { %v644_v49 = vmax.f32 %v643_v44, %v627_v46 }
 0x357   :  { %v631_v41 = vpop.xlane.xlu1 %630  ;;  %v744_v42 = vpop.xlane.xlu0 %743 }
 0x358   :  { %v739_v43 = vpop.xlane.xlu2 %738  ;;  %v632_v47 = vadd.f32 %v1011_v38, %v631_v41  ;;  %v745_v59 = vadd.f32 %v1011_v38, %v744_v42 }
 0x359   :  { %v740_v58 = vadd.f32 %v1011_v38, %v739_v43 }
 0x35a   :  { %v645_v54 = vmax.f32 %v644_v49, %v632_v47 }
 0x35b   :  { %v766_v2 = vmax.f32 %v740_v58, %v745_v59 }
 0x35f   :  { %v636_v52 = vpop.xlane.xlu1 %635  ;;  %v641_v53 = vpop.xlane.xlu0 %640 }
 0x360   :  { %v637_v56 = vadd.f32 %v1011_v38, %v636_v52  ;;  %v749_v57 = vpop.xlane.xlu2 %748  ;;  %v642_v61 = vadd.f32 %v1011_v38, %v641_v53 }
 0x361   :  { %v750_v0 = vadd.f32 %v1011_v38, %v749_v57 }
 0x362   :  { %v646_v60 = vmax.f32 %v645_v54, %v637_v56 }
 0x363   :  { %v767_v9 = vmax.f32 %v766_v2, %v750_v0 }
 0x364   :  { %v647_v1 = vmax.f32 %v646_v60, %v642_v61 }
 0x366   :  { %v648_v3 = vsub.f32 %v617_v39, %v647_v1  ;;  %v651_v4 = vsub.f32 %v622_v40, %v647_v1  ;;  %v654_v5 = vsub.f32 %v627_v46, %v647_v1  ;;  %v657_v6 = vsub.f32 %v632_v47, %v647_v1 }
 0x367   :  { %v754_v8 = vpop.xlane.xlu1 %753  ;;  %v660_v18 = vsub.f32 %v637_v56, %v647_v1  ;;  %v764_v19 = vpop.xlane.xlu0 %763  ;;  %v663_v23 = vsub.f32 %v642_v61, %v647_v1 }
 0x368   :  { %v649_v10 = vmul.f32 1.442695, %v648_v3  ;;  %v652_v12 = vmul.f32 1.442695, %v651_v4  ;;  %v755_v13 = vadd.f32 %v1011_v38, %v754_v8  ;;  %v759_v14 = vpop.xlane.xlu2 %758  ;;  %v655_v17 = vmul.f32 1.442695, %v654_v5 }
 0x369   :  { %v760_v21 = vadd.f32 %v1011_v38, %v759_v14  ;;  %v658_v22 = vmul.f32 1.442695, %v657_v6  ;;  %v765_v25 = vadd.f32 %v1011_v38, %v764_v19  ;;  %v661_v26 = vmul.f32 1.442695, %v660_v18 }
 0x36a   :  { %1021 = vpow2.f32 %v649_v10  ;;  %v768_v20 = vmax.f32 %v767_v9, %v755_v13  ;;  %v664_v28 = vmul.f32 1.442695, %v663_v23 }
 0x36b   :  { %1023 = vpow2.f32 %v652_v12 }
 0x36c   :  { %v769_v24 = vmax.f32 %v768_v20, %v760_v21  ;;  %1025 = vpow2.f32 %v655_v17 }
 0x36d   :  { %1027 = vpow2.f32 %v658_v22 }
 0x36e   :  { %v770_v27 = vmax.f32 %v769_v24, %v765_v25  ;;  %1029 = vpow2.f32 %v661_v26 }
 0x36f   :  { %1031 = vpow2.f32 %v664_v28  ;;  %v862_v28 = vld [vmem:[%s1493_s4 + $0xf0] sm:$0xff] }
 0x370   :  { %v1396_v30 = vpop.eup %1021  ;;  %v771_v33 = vsub.f32 %v740_v58, %v770_v27  ;;  %v774_v34 = vsub.f32 %v745_v59, %v770_v27  ;;  %v777_v35 = vsub.f32 %v750_v0, %v770_v27  ;;  %v780_v39 = vsub.f32 %v755_v13, %v770_v27  ;;  %906 = vmatpush.msra.mxu1 %v862_v28 }
 0x371   :  { %v1398_v36 = vpop.eup %1023  ;;  %v783_v38 = vsub.f32 %v760_v21, %v770_v27  ;;  %v786_v46 = vsub.f32 %v765_v25, %v770_v27 }
 0x372   :  { %v666_v40 = vadd.f32 %v1398_v36, %v1396_v30  ;;  %v772_v41 = vmul.f32 1.442695, %v771_v33  ;;  %v775_v42 = vmul.f32 1.442695, %v774_v34  ;;  %v1402_v43 = vpop.eup %1025  ;;  %v778_v44 = vmul.f32 1.442695, %v777_v35 }
 0x373   :  { %v1405_v49 = vpop.eup %1027  ;;  %v781_v52 = vmul.f32 1.442695, %v780_v39  ;;  %v784_v54 = vmul.f32 1.442695, %v783_v38  ;;  %v787_v57 = vmul.f32 1.442695, %v786_v46 }
 0x374   :  { %v667_v47 = vadd.f32 %v1402_v43, %v666_v40  ;;  %1033 = vpow2.f32 %v772_v41  ;;  %v1408_v56 = vpop.eup %1029 }
 0x375   :  { %1035 = vpow2.f32 %v775_v42  ;;  %v1411_v59 = vpop.eup %1031 }
 0x376   :  { %v668_v53 = vadd.f32 %v1405_v49, %v667_v47  ;;  %1037 = vpow2.f32 %v778_v44  ;;  %s997_s25 = spop %996 }
 0x377   :  { %s999_s26 = spop %998  ;;  %1039 = vpow2.f32 %v781_v52 }
 0x378   :  { %v669_v58 = vadd.f32 %v1408_v56, %v668_v53  ;;  %s253_s27 = smul.f32 %s999_s26, %s997_s25  ;;  %1041 = vpow2.f32 %v784_v54 }
 0x379   :  { %1043 = vpow2.f32 %v787_v57 }
 0x37a   :  { %v1413_v60 = vpop.eup %1033  ;;  %v670_v61 = vadd.f32 %v1411_v59, %v669_v58  ;;  %v254_v1 = vstv %s253_s27 }
 0x37b   :  { %v1416_v0 = vpop.eup %1035  ;;  %v266_v22 = vand.u32 2147483648, %v254_v1  ;;  %v264_v26 = vand.u32 2147483647, %v254_v1  ;;  %vm260_vm0 = vweird.f32 %v254_v1 }
 0x37c   :  { %1045 = vrcp.f32 %v670_v61  ;;  %v789_v2 = vadd.f32 %v1416_v0, %v1413_v60  ;;  %v1420_v3 = vpop.eup %1037  ;;  %v682_v21 = vand.u32 2147483648, %v670_v61  ;;  %v680_v24 = vand.u32 2147483647, %v670_v61 }
 0x37d   :  { %1047 = vrcp.f32 %v254_v1  ;;  %v1423_v5 = vpop.eup %1039  ;;  %vm676_vm6 = vweird.f32 %v670_v61  ;;  %v267_v35 = vor.u32 1.1754944e-38, %v266_v22  ;;  %vm265_vm9 = vcmp.eq.f32.partialorder %v264_v26, 8.507059e+37 }
 0x37e   :  { %v790_v4 = vadd.f32 %v1420_v3, %v789_v2  ;;  %v1425_v6 = vpop.eup %1041  ;;  %v683_v34 = vor.u32 1.1754944e-38, %v682_v21  ;;  %vm681_vm7 = vcmp.eq.f32.partialorder %v680_v24, 8.507059e+37 }
 0x37f   :  { %v1428_v9 = vpop.eup %1043 }
 0x380   :  { %v791_v8 = vadd.f32 %v1423_v5, %v790_v4 }
 0x382   :  { %v1046_v10 = vpop.eup %1045  ;;  %v792_v12 = vadd.f32 %v1425_v6, %v791_v8 }
 0x383   :  { %v1048_v13 = vpop.eup %1047  ;;  %v672_v14 = vmul.f32 %v1046_v10, %v670_v61  ;;  %vm677_vm3 = vweird.f32 %v1046_v10 }
 0x384   :  { %v793_v17 = vadd.f32 %v1428_v9, %v792_v12  ;;  %v256_v18 = vmul.f32 %v1048_v13, %v254_v1  ;;  %vm261_vm5 = vweird.f32 %v1048_v13  ;;  %vm678_vm1 = vmor %vm676_vm6, %vm677_vm3 }
 0x385   :  { %v673_v19 = vsub.f32 1.0, %v672_v14  ;;  %vm262_vm8 = vmor %vm260_vm0, %vm261_vm5 }
 0x386   :  { %1049 = vrcp.f32 %v793_v17  ;;  %v257_v20 = vsub.f32 1.0, %v256_v18  ;;  %v805_v54 = vand.u32 2147483648, %v793_v17  ;;  %v803_v58 = vand.u32 2147483647, %v793_v17 }
 0x387   :  { %v674_v23 = vmul.f32 %v1046_v10, %v673_v19  ;;  %vm799_vm11 = vweird.f32 %v793_v17 }
 0x388   :  { %v258_v25 = vmul.f32 %v1048_v13, %v257_v20  ;;  %v806_v1 = vor.u32 1.1754944e-38, %v805_v54  ;;  %vm804_vm13 = vcmp.eq.f32.partialorder %v803_v58, 8.507059e+37 }
 0x389   :  { %v675_v27 = vadd.f32 %v1046_v10, %v674_v23 }
 0x38a   :  { %v259_v33 = vadd.f32 %v1048_v13, %v258_v25 }
 0x38b   :  { %v679_v39 = vsel %vm678_vm1, %v1046_v10, %v675_v27 }
 0x38c   :  { %v1050_v40 = vpop.eup %1049  ;;  %v263_v41 = vsel %vm262_vm8, %v1048_v13, %v259_v33  ;;  %v684_v42 = vsel %vm681_vm7, %v683_v34, %v679_v39 }
 0x38d   :  { %v795_v38 = vmul.f32 %v1050_v40, %v793_v17  ;;  %v268_v44 = vsel %vm265_vm9, %v267_v35, %v263_v41  ;;  %v701_v46 = vmul.f32 %v1402_v43, %v684_v42  ;;  %v693_v47 = vmul.f32 %v1398_v36, %v684_v42  ;;  %v866_v17 = vld [vmem:[%s1493_s4 + $0xc8] sm:$0xff] }
 0x38e   :  { %1000 = vpush %v268_v44  ;;  %v686_v52 = vmul.f32 %v1396_v30, %v684_v42  ;;  %vm800_vm10 = vweird.f32 %v1050_v40  ;;  %v709_v43 = vmul.f32 %v1405_v49, %v684_v42  ;;  %v717_v8 = vmul.f32 %v1408_v56, %v684_v42  ;;  %v861_v49 = vld [vmem:[%s1493_s4 + $0xe8] sm:$0xff]  ;;  %v859_v56 = vld [vmem:[%s1493_s4 + $0xd8] sm:$0xff]  ;;  %883 = vmatpush.msra.mxu3 %v866_v17 }
 0x38f   :  { %v796_v53 = vsub.f32 1.0, %v795_v38  ;;  %704 = vperm.xlu0 %1005, %v701_v46   ;;  %696 = vperm.xlu2 %1007, %v693_v47   ;;  %vm801_vm12 = vmor %vm799_vm11, %vm800_vm10  ;;  %v725_v10 = vmul.f32 %v1411_v59, %v684_v42 }
 0x390   :  { %689 = vperm.xlu1 %1006, %v686_v52   ;;  %907 = vmatpush.msra.mxu1 %v861_v49 }
 0x391   :  { %v797_v57 = vmul.f32 %v1050_v40, %v796_v53 }
 0x393   :  { %v798_v61 = vadd.f32 %v1050_v40, %v797_v57 }
 0x395   :  { %v802_v2 = vsel %vm801_vm12, %v1050_v40, %v798_v61 }
 0x396   :  { %v807_v36 = vsel %vm804_vm13, %v806_v1, %v802_v2 }
 0x397   :  { %v816_v4 = vmul.f32 %v1416_v0, %v807_v36  ;;  %v809_v30 = vmul.f32 %v1413_v60, %v807_v36  ;;  %v824_v12 = vmul.f32 %v1420_v3, %v807_v36  ;;  %v860_v60 = vld [vmem:[%s1493_s4 + $0xe0] sm:$0xff]  ;;  %v832_v59 = vmul.f32 %v1423_v5, %v807_v36 }
 0x398   :  { %712 = vperm.xlu1 %1006, %v709_v43   ;;  %908 = vmatpush.msra.mxu1 %v860_v60  ;;  %v848_v0 = vmul.f32 %v1428_v9, %v807_v36  ;;  %v840_v3 = vmul.f32 %v1425_v6, %v807_v36  ;;  %v865_v5 = vld [vmem:[%s1493_s4 + $0xc0] sm:$0xff]  ;;  %v864_v6 = vld [vmem:[%s1493_s4 + $0xb8] sm:$0xff] }
 0x399   :  { %819 = vperm.xlu2 %1007, %v816_v4   ;;  %812 = vperm.xlu0 %1005, %v809_v30  }
 0x39a   :  { %909 = vmatpush.msra.mxu1 %v859_v56  ;;  %884 = vmatpush.msra.mxu3 %v865_v5 }
 0x39c   :  { %885 = vmatpush.msra.mxu3 %v864_v6 }
 0x3a0   :  { %720 = vperm.xlu1 %1006, %v717_v8  }
 0x3a1   :  { %728 = vperm.xlu2 %1007, %v725_v10   ;;  %827 = vperm.xlu0 %1005, %v824_v12  }
 0x3a8   :  { %835 = vperm.xlu1 %1006, %v832_v59  }
 0x3a9   :  { %851 = vperm.xlu2 %1007, %v848_v0   ;;  %843 = vperm.xlu0 %1005, %v840_v3  }
 0x3bf   :  { %s1001_s0 = spop %1000 }
 0x3c0   :  { %s270_s10 = smul.f32 5.656854, %s1001_s0 }
 0x3c2   :  { %v298_v13 = vstv %s270_s10 }
 0x3c3   :  { %v299_v14 = vmul.f32 %v298_v13, %v1344_v16  ;;  %v863_v16 = vld [vmem:[%s1493_s4 + $0xb0] sm:$0xff] }
 0x3c4   :  { %886 = vmatpush.msra.mxu3 %v863_v16 }
 0x3c5   :  { %977 = vmatmul.msk.f32.vlgmr.msra.gmra.mxu1 %vm144_vm4, %v299_v14 }
 0x3e9   :  { %v697_v9 = vpop.permute.xlu2 %696 }
 0x3ea   :  { %v699_v23 = vmul.f32 %v697_v9, %v1332_v50 }
 0x3f3   :  { %v820_v20 = vpop.permute.xlu2 %819 }
 0x3fb   :  { %v729_v33 = vpop.permute.xlu2 %728 }
 0x3fc   :  { %v731_v50 = vmul.f32 %v729_v33, %v1340_v11 }
 0x401   :  { %v705_v19 = vpop.permute.xlu0 %704 }
 0x402   :  { %v690_v18 = vpop.permute.xlu1 %689  ;;  %v707_v26 = vmul.f32 %v705_v19, %v1334_v48 }
 0x403   :  { %v692_v21 = vmul.f32 %v690_v18, %v1361_v45  ;;  %v822_v45 = vmul.f32 %v820_v20, %v1348_v31  ;;  %v852_v53 = vpop.permute.xlu2 %851 }
 0x404   :  { %v854_v57 = vmul.f32 %v852_v53, %v1385_v7 }
 0x405   :  { %v700_v25 = vadd.f32 %v699_v23, %v692_v21 }
 0x407   :  { %v708_v28 = vadd.f32 %v707_v26, %v700_v25 }
 0x40a   :  { %v713_v22 = vpop.permute.xlu1 %712 }
 0x40b   :  { %v813_v24 = vpop.permute.xlu0 %812  ;;  %v715_v27 = vmul.f32 %v713_v22, %v1336_v55 }
 0x40c   :  { %v815_v41 = vmul.f32 %v813_v24, %v1342_v15 }
 0x40d   :  { %v716_v35 = vadd.f32 %v715_v27, %v708_v28 }
 0x40e   :  { %v823_v44 = vadd.f32 %v822_v45, %v815_v41 }
 0x412   :  { %v721_v34 = vpop.permute.xlu1 %720 }
 0x413   :  { %v723_v39 = vmul.f32 %v721_v34, %v1338_v63  ;;  %v828_v40 = vpop.permute.xlu0 %827 }
 0x414   :  { %v830_v38 = vmul.f32 %v828_v40, %v1354_v37 }
 0x415   :  { %v724_v42 = vadd.f32 %v723_v39, %v716_v35 }
 0x416   :  { %v831_v55 = vadd.f32 %v830_v38, %v823_v44 }
 0x417   :  { %v732_v48 = vadd.f32 %v731_v50, %v724_v42 }
 0x419   :  { %v733_v54 = vadd.f32 %v732_v48, %v1350_v32 }
 0x41a   :  { %v836_v46 = vpop.permute.xlu1 %835 }
 0x41b   :  { %v838_v47 = vmul.f32 %v836_v46, %v1366_v51  ;;  %v844_v52 = vpop.permute.xlu0 %843  ;;  %v856_v11 = vadd.f32 %v733_v54, %v1346_v29  ;;  %v1012_v51 = vld [vmem:[%s1493_s4 + $0xd0] ss:$0 sm:$0xff] }
 0x41c   :  { %v846_v63 = vmul.f32 %v844_v52, %v1376_v62 }
 0x41d   :  { %v839_v15 = vadd.f32 %v838_v47, %v831_v55 }
 0x41f   :  { %v847_v31 = vadd.f32 %v846_v63, %v839_v15 }
 0x421   :  { %v855_v58 = vadd.f32 %v854_v57, %v847_v31 }
 0x423   :  { %v857_v37 = vadd.f32 %v856_v11, %v855_v58 }
 0x425   :  { %v858_v61 = vmul.f32 0.5, %v857_v37 }
 0x427   :  { %976 = vmatmul.msk.f32.vlgmr.msra.gmra.mxu3 %vm144_vm4, %v858_v61 }
 0x442   :  { %v911_v1 = vpop.f32.mrf.mxu1 }
 0x4aa   :  { %v888_v2 = vpop.f32.mrf.mxu3 }
 0x4ab   :  { %v912_v62 = vadd.f32 %v911_v1, %v888_v2 }
 0x4ad   :  { %v915_v43 = vadd.f32 %v1012_v51, %v912_v62 }
 0x4af   :  { %916 = vst [vmem:[%s1496_s5] sm:$0xff] %v915_v43 }

</bundles_post_ra>
